<compile_context>
chip_gen: v7x
topology: tpu7x:2x2x1
jax: 0.10.0
libtpu: 0.0.40
codegen_flags: <defaults>
</compile_context>

<pallas_src>
import math
import functools

import jax
import jax.numpy as jnp
from jax.experimental import pallas as pl
from jax.experimental.pallas import tpu as pltpu


def _round_up(x: int, m: int) -> int:
    return (x + m - 1) // m * m


def _choose_tiling(n_tok: int, packing: int, cap_rows: int):
    """Pick (tok_tile, n_pad).

    Prefer a tile that divides n_tok exactly (no output padding => no sliced
    whole-output copy); otherwise pad up to a multiple of a large tile.
    """
    cap = max(packing, (cap_rows // packing) * packing)
    if n_tok % packing == 0:
        best = 0
        t = packing
        limit = min(cap, n_tok)
        while t <= limit:
            if n_tok % t == 0:
                best = t
            t += packing
        if best >= min(n_tok, 128):
            return best, n_tok
    tile = min(cap, _round_up(n_tok, packing))
    return tile, _round_up(n_tok, tile)


# ---------------------------------------------------------------------------
# Fast path: whole embedding table resident in VMEM, one-hot gather on the MXU
# ---------------------------------------------------------------------------
def _embed_vmem_table_kernel(ids_ref, table_ref, out_ref, *, scale):
    # ids_ref:   (TOK_TILE, 1) int32
    # table_ref: (V, D) full table, resident in VMEM across all grid steps
    # out_ref:   (TOK_TILE, D)
    tok_tile = out_ref.shape[0]
    vocab = table_ref.shape[0]
    onehot = (ids_ref[...] ==
              jax.lax.broadcasted_iota(jnp.int32, (tok_tile, vocab), 1))
    onehot = onehot.astype(table_ref.dtype)
    # HIGHEST precision so the one-hot "gather" reproduces table rows exactly.
    emb = jnp.dot(onehot, table_ref[...],
                  preferred_element_type=jnp.float32,
                  precision=jax.lax.Precision.HIGHEST)
    out_ref[...] = (emb * scale).astype(out_ref.dtype)


def _embed_with_vmem_table(flat_ids, table, scale, packing):
    n_tok = flat_ids.shape[0]
    V, D = table.shape
    itemsize = jnp.dtype(table.dtype).itemsize

    # Keep the f32 one-hot (TOK_TILE, V) and each (TOK_TILE, D) output buffer
    # around <=2 MiB so the resident table + double-buffered blocks stay inside
    # even v5e's 16 MiB scoped-VMEM default.
    onehot_rows = (2 * 1024 * 1024) // max(1, V * 4)
    out_rows = (2 * 1024 * 1024) // max(1, D * itemsize)
    tok_tile, n_pad = _choose_tiling(n_tok, packing,
                                     min(512, onehot_rows, out_rows))

    ids = flat_ids
    if n_pad != n_tok:
        ids = jnp.pad(flat_ids, (0, n_pad - n_tok))  # pad with valid id 0
    ids2d = ids.reshape(n_pad, 1)

    kernel = functools.partial(_embed_vmem_table_kernel, scale=scale)
    out = pl.pallas_call(
        kernel,
        out_shape=jax.ShapeDtypeStruct((n_pad, D), table.dtype),
        grid=(n_pad // tok_tile,),
        in_specs=[
            pl.BlockSpec((tok_tile, 1), lambda i: (i, 0)),
            pl.BlockSpec((V, D), lambda i: (0, 0)),  # table resident in VMEM
        ],
        out_specs=pl.BlockSpec((tok_tile, D), lambda i: (i, 0)),
        compiler_params=pltpu.CompilerParams(
            dimension_semantics=("parallel",),
            vmem_limit_bytes=32 * 1024 * 1024),
    )(ids2d, table)
    return out if n_pad == n_tok else out[:n_tok]


# ---------------------------------------------------------------------------
# General path: table in HBM, deep-window manual row-DMA gather, double-buffered
# ---------------------------------------------------------------------------
def _embed_hbm_gather_kernel(ids_ref, table_hbm, out_ref, rows_vmem, sems,
                             *, scale, tok_tile):
    # ids_ref:    SMEM int32[n_pad]       (scalar prefetch)
    # table_hbm:  (V, D) raw HBM ref      (memory_space=pl.ANY)
    # out_ref:    (TOK_TILE, D) output block
    # rows_vmem:  (2, TOK_TILE, D) double-buffered gather scratch
    # sems:       (2,) DMA semaphores, one per scratch slot
    step = pl.program_id(0)
    n_steps = pl.num_programs(0)
    slot = step % 2

    def start_tile(tile_idx, buf_slot):
        base = tile_idx * tok_tile

        @pl.loop(0, tok_tile)
        def _(t):
            row = ids_ref[base + t]
            pltpu.make_async_copy(
                table_hbm.at[pl.ds(row, 1), :],
                rows_vmem.at[buf_slot, pl.ds(t, 1), :],
                sems.at[buf_slot],
            ).start()

    # First grid step: launch ALL of tile 0's row DMAs before any wait so the
    # DMA engine pipelines the whole tile (no 8-deep wait->start chain).
    @pl.when(step == 0)
    def _():
        start_tile(0, 0)

    # Cross-step overlap: kick off the NEXT tile's gather into the other
    # scratch slot now, so it runs under this step's compute + output writeback.
    @pl.when(step + 1 < n_steps)
    def _():
        start_tile(step + 1, 1 - slot)

    # Wait for the current tile.  Waits only need the per-copy byte count, so
    # use a fixed row-0 descriptor: no SMEM id reads or per-row descriptor
    # rebuilds on the wait side.
    @pl.loop(0, tok_tile)
    def _(t):
        pltpu.make_async_copy(
            table_hbm.at[pl.ds(0, 1), :],
            rows_vmem.at[slot, pl.ds(0, 1), :],
            sems.at[slot],
        ).wait()

    emb = rows_vmem[slot].astype(jnp.float32) * scale
    out_ref[...] = emb.astype(out_ref.dtype)


# SMEM guard: scalar-prefetched int32 ids pad to next_pow2(4*n) bytes, so chunk
# extremely long token streams across calls (rarely hit).
# TODO(synk): switch to per-tile blocked SMEM id inputs to cover any token
# count in a single pallas_call.
_MAX_TOKENS_PER_CALL = 65536


def _embed_with_hbm_gather(flat_ids, table, scale, packing):
    n_tok = flat_ids.shape[0]
    if n_tok > _MAX_TOKENS_PER_CALL:
        parts = [
            _embed_with_hbm_gather(flat_ids[s:s + _MAX_TOKENS_PER_CALL],
                                   table, scale, packing)
            for s in range(0, n_tok, _MAX_TOKENS_PER_CALL)
        ]
        return jnp.concatenate(parts, axis=0)

    V, D = table.shape
    itemsize = jnp.dtype(table.dtype).itemsize

    # ~2 MiB per (TOK_TILE, D) buffer, capped at 512 rows; with the 2x scratch
    # and double-buffered output block this stays under every generation's
    # scoped-VMEM default.
    out_rows = (2 * 1024 * 1024) // max(1, D * itemsize)
    tok_tile, n_pad = _choose_tiling(n_tok, packing, min(512, out_rows))

    ids = flat_ids
    if n_pad != n_tok:
        ids = jnp.pad(flat_ids, (0, n_pad - n_tok))  # pad with valid id 0

    kernel = functools.partial(_embed_hbm_gather_kernel, scale=scale,
                               tok_tile=tok_tile)
    out = pl.pallas_call(
        kernel,
        out_shape=jax.ShapeDtypeStruct((n_pad, D), table.dtype),
        grid_spec=pltpu.PrefetchScalarGridSpec(
            num_scalar_prefetch=1,                       # token ids -> SMEM
            grid=(n_pad // tok_tile,),
            in_specs=[pl.BlockSpec(memory_space=pl.ANY)],  # table stays in HBM
            out_specs=pl.BlockSpec((tok_tile, D), lambda i, ids: (i, 0)),
            scratch_shapes=[
                pltpu.VMEM((2, tok_tile, D), table.dtype),
                pltpu.SemaphoreType.DMA((2,)),
            ],
        ),
        # Tile i+1 is prefetched into the shared scratch at step i, so the grid
        # must run sequentially on one core -> "arbitrary".
        compiler_params=pltpu.CompilerParams(
            dimension_semantics=("arbitrary",),
            vmem_limit_bytes=32 * 1024 * 1024),
    )(ids, table)
    return out if n_pad == n_tok else out[:n_tok]


# ---------------------------------------------------------------------------
# Public wrapper: InputEmbeddings.forward equivalent
# ---------------------------------------------------------------------------
def input_embeddings(token_ids, embedding_table, *, prefer_vmem_table=None):
    """embedding(token_ids) * sqrt(d_model)  (matches the PyTorch module)."""
    B, S = token_ids.shape
    V, D = embedding_table.shape
    n_tok = B * S
    scale = float(math.sqrt(D))

    # Safety: clamp ids so a bad id can never drive an out-of-range row fetch.
    flat_ids = jnp.clip(token_ids.reshape(n_tok).astype(jnp.int32), 0, V - 1)

    itemsize = jnp.dtype(embedding_table.dtype).itemsize
    packing = max(1, 4 // itemsize) * 8  # 8-row tiles for f32, 16 for bf16
    table_bytes = V * D * itemsize
    is_float = jnp.issubdtype(embedding_table.dtype, jnp.floating)

    if prefer_vmem_table is None:
        # Resident-table one-hot MXU gather beats thousands of ~1 KiB row DMAs
        # for small/medium float vocabs; cap kept modest so it fits every
        # generation's scoped-VMEM default.
        prefer_vmem_table = (is_float and V <= 2048
                             and table_bytes <= 4 * 1024 * 1024)
    # MXU one-hot path only valid for floating-point tables.
    prefer_vmem_table = bool(prefer_vmem_table) and bool(is_float)

    if prefer_vmem_table:
        out_flat = _embed_with_vmem_table(flat_ids, embedding_table, scale, packing)
    else:
        out_flat = _embed_with_hbm_gather(flat_ids, embedding_table, scale, packing)

    return out_flat.reshape(B, S, D)


if __name__ == "__main__":
    key = jax.random.PRNGKey(0)
    k1, k2, k3, k4, k5 = jax.random.split(key, 5)

    # --- Test 1: small-vocab fast path (table resident in VMEM) -------------
    d_model, vocab_size, B, S = 128, 64, 2, 8
    token_ids = jax.random.randint(k1, (B, S), 0, vocab_size, dtype=jnp.int32)
    table = jax.random.normal(k2, (vocab_size, d_model), dtype=jnp.float32)

    out = jax.block_until_ready(input_embeddings(token_ids, table))
    ref = jnp.take(table, token_ids, axis=0) * math.sqrt(d_model)
    assert out.shape == (B, S, d_model)
    assert jnp.allclose(out, ref, atol=1e-5, rtol=1e-5), "fast path mismatch"

    # --- Test 2: general path, multi-tile (deep DMA window + double buffer) -
    d_model2, vocab2, B2, S2 = 256, 512, 4, 300   # 1200 tokens -> 3 tiles of 400
    token_ids2 = jax.random.randint(k3, (B2, S2), 0, vocab2, dtype=jnp.int32)
    table2 = jax.random.normal(k4, (vocab2, d_model2), dtype=jnp.float32)

    out2 = jax.block_until_ready(
        input_embeddings(token_ids2, table2, prefer_vmem_table=False))
    ref2 = jnp.take(table2, token_ids2, axis=0) * math.sqrt(d_model2)
    assert out2.shape == (B2, S2, d_model2)
    assert jnp.allclose(out2, ref2, atol=1e-5, rtol=1e-5), "gather path mismatch"

    # --- Test 3: general path, ragged token count (pad + slice branch) ------
    token_ids3 = jax.random.randint(k5, (1, 13), 0, vocab2, dtype=jnp.int32)
    out3 = jax.block_until_ready(
        input_embeddings(token_ids3, table2, prefer_vmem_table=False))
    ref3 = jnp.take(table2, token_ids3, axis=0) * math.sqrt(d_model2)
    assert out3.shape == (1, 13, d_model2)
    assert jnp.allclose(out3, ref3, atol=1e-5, rtol=1e-5), "ragged gather mismatch"

    print("KERNEL_OK")
</pallas_src>

<mosaic_0001>
module attributes {stable_mosaic.version = 11 : i64} {
  func.func @_embed_vmem_table_kernel(%arg0: i32, %arg1: memref<16x1xi32, #tpu.memory_space<vmem>>, %arg2: memref<64x128xf32, #tpu.memory_space<vmem>>, %arg3: memref<16x128xf32, #tpu.memory_space<vmem>>) attributes {dimension_semantics = [#tpu.dimension_semantics<parallel>], iteration_bounds = array<i64: 1>, scalar_prefetch = 0 : i64, scratch_operands = 0 : i64, tpu.core_type = #tpu.core_type<tc>, window_params = [{transform_indices = @transform_0, window_bounds = array<i64: 16, 1>}, {pipeline_mode = #tpu.pipeline_mode<synchronous>, transform_indices = @transform_1, window_bounds = array<i64: 64, 128>}, {transform_indices = @transform_2, window_bounds = array<i64: 16, 128>}]} {
    %c0 = arith.constant 0 : index
    %c0_0 = arith.constant 0 : index
    %0 = vector.load %arg1[%c0, %c0_0] : memref<16x1xi32, #tpu.memory_space<vmem>>, vector<16x1xi32>
    %1 = tpu.iota {dimensions = array<i32: 1>} : vector<16x64xi32>
    %2 = vector.broadcast %0 : vector<16x1xi32> to vector<16x64xi32>
    %3 = arith.cmpi eq, %2, %1 : vector<16x64xi32>
    %4 = arith.extui %3 : vector<16x64xi1> to vector<16x64xi32>
    %5 = arith.sitofp %4 : vector<16x64xi32> to vector<16x64xf32>
    %c0_1 = arith.constant 0 : index
    %c0_2 = arith.constant 0 : index
    %6 = vector.load %arg2[%c0_1, %c0_2] : memref<64x128xf32, #tpu.memory_space<vmem>>, vector<64x128xf32>
    %cst = arith.constant dense<0.000000e+00> : vector<16x128xf32>
    %7 = tpu.matmul %5, %6, %cst {dimension_numbers = #tpu.dot_dimension_numbers<[1], [0], [0], [1], [0, 0, 1, 1], [], []>, precision = #tpu.contract_precision<fp32>} : vector<16x64xf32>, vector<64x128xf32>, vector<16x128xf32> -> vector<16x128xf32>
    %cst_3 = arith.constant 11.3137083 : f32
    %8 = vector.broadcast %cst_3 : f32 to vector<16x128xf32>
    %9 = arith.mulf %7, %8 : vector<16x128xf32>
    %c0_4 = arith.constant 0 : index
    %c0_5 = arith.constant 0 : index
    %10 = vector.load %arg3[%c0_4, %c0_5] : memref<16x128xf32, #tpu.memory_space<vmem>>, vector<16x128xf32>
    tpu.vector_store %arg3[%c0_4, %c0_5], %9 {strides = array<i32>} : memref<16x128xf32, #tpu.memory_space<vmem>>, vector<16x128xf32>,
    return
  }
  func.func @transform_0(%arg0: i32) -> (i32, i32) {
    %c0_i32 = arith.constant 0 : i32
    %c0_i32_0 = arith.constant 0 : i32
    return %arg0, %c0_i32 : i32, i32
  }
  func.func @transform_1(%arg0: i32) -> (i32, i32) {
    %c0_i32 = arith.constant 0 : i32
    %c0_i32_0 = arith.constant 0 : i32
    %c0_i32_1 = arith.constant 0 : i32
    return %c0_i32, %c0_i32_0 : i32, i32
  }
  func.func @transform_2(%arg0: i32) -> (i32, i32) {
    %c0_i32 = arith.constant 0 : i32
    %c0_i32_0 = arith.constant 0 : i32
    return %arg0, %c0_i32 : i32, i32
  }
}

</mosaic_0001>

<bundles_post_ra>
// kernel: tpu_custom_call.1
= control target key start
LH: loop header
LB: loop body
LE: loop exit
PB: predicated region body
PF: predicated region fallthrough
CT: control target
= control target key end

     0   :  { %7 = vsyncpa [#allocation3], 0  ;;  %s1102_s0 = inlined_call_operand.vmem [shape: s32[16,1], index: 0, kind: input, shape index: {}]   ;;  %s1103_s1 = inlined_call_operand.hbm [shape: f32[64,128], index: 1, kind: input, shape index: {}]   ;;  %s1104_s2 = inlined_call_operand.hbm [shape: f32[16,128], index: 2, kind: output, shape index: {}]  }
   0x1   :  { %8 = vsyncpa [#allocation4], 0  ;;  %s1001_s9 = smov [#allocation2]   ;;  %s953_s13 = scalar_lea.hbm %s1103_s1, 1024 }
   0x2   :  { %s16_s10 = sshll.u32 %s1001_s9, 4  ;;  %p954_p0 = scmp.ne.s32.totalorder %s1103_s1, %s953_s13  ;;  %s17_s10 = int_to_ptr.vmem [resolvable:$true] %s16_s10 }
   0x3   :  { %p957_p1 = scmp.lt.u32.totalorder %s953_s13, %s1103_s1 }
   0x5   :  { %p959_p2 = pnand %p957_p1, %p954_p0 }
   0x7   :  { %962 = shalt.err (!%p959_p2)
}
   0x8   :  { %s963_s18 = scalar_lea.vmem %s17_s10, 1024  ;;  %p968_p4 = scmp.lt.s32.totalorder %s17_s10, %s17_s10 }
   0x9   :  { %p964_p3 = scmp.ne.s32.totalorder %s17_s10, %s963_s18  ;;  %p969_p5 = scmp.lt.s32.totalorder %s963_s18, %s963_s18 }
   0xb   :  { %p970_p6 = por %p969_p5, %p968_p4 }
   0xd   :  { %p971_p7 = pnand %p970_p6, %p964_p3 }
   0xf   :  { %974 = shalt.err (!%p971_p7)
}
  0x10   :  { %s1002_s19 = smov 128   ;;  %s1003_s20 = smov 8  }
  0x11   :  { %22 = dma.hbm_to_vmem [thread:$0]  %s1103_s1, 1024, %s17_s10, [#allocation3], %s1002_s19, %s1002_s19, %s1003_s20  }
  0x12   :  { %997 = dma.done.wait [#allocation3], 1024  }
  0x13   :  { %998 = vsyncadd [#allocation3], 4294966272  ;;  %v1004_v0 = vmov 0   ;;  %v26_v1 = vld [vmem:[%s1102_s0] sm:$0xff]  ;;  %v43_v3 = vld [vmem:[#allocation2 + $0x8] sm:$0xff]  ;;  %vm50_vm0 = vcmask 523264  }
  0x14   :  { %952 = vset.pattern.permute.xlu0 %v1004_v0  ;;  %v42_v2 = vld [vmem:[#allocation2] sm:$0xff]  ;;  %v44_v5 = vld [vmem:[#allocation2 + $0x10] sm:$0xff]  ;;  %v45_v6 = vld [vmem:[#allocation2 + $0x18] sm:$0xff]  ;;  %v61_v8 = vand.u32 4294901760, %v43_v3 }
  0x15   :  { %31 = vperm.xlu0 %952, %v26_v1   ;;  %v58_v4 = vand.u32 4294901760, %v42_v2  ;;  %v27_v7 = vld [vmem:[%s1102_s0 + $0x8] sm:$0xff]  ;;  %v64_v9 = vand.u32 4294901760, %v44_v5  ;;  %v67_v10 = vand.u32 4294901760, %v45_v6  ;;  %v46_v11 = vld [vmem:[#allocation2 + $0x20] sm:$0xff]  ;;  %v48_v17 = vld [vmem:[#allocation2 + $0x30] sm:$0xff] }
  0x16   :  { %v47_v12 = vld [vmem:[#allocation2 + $0x28] sm:$0xff]  ;;  %v70_v15 = vand.u32 4294901760, %v46_v11  ;;  %v49_v18 = vld [vmem:[#allocation2 + $0x38] sm:$0xff]  ;;  %v159_v20 = vsub.f32 %v43_v3, %v61_v8  ;;  %v76_v21 = vand.u32 4294901760, %v48_v17  ;;  %v28_v3 = vlaneseq  ;;  %s1006_s0 = smov [#allocation5]  }
  0x17   :  { %v1043_v13 = vpack.c.bf16 %v61_v8, %v58_v4  ;;  %v1045_v14 = vpack.c.bf16 %v67_v10, %v64_v9  ;;  %v73_v16 = vand.u32 4294901760, %v47_v12  ;;  %v152_v19 = vsub.f32 %v42_v2, %v58_v4  ;;  %s646_s1 = sshll.u32 %s1006_s0, 4  ;;  %s647_s1 = int_to_ptr.vmem [resolvable:$true] %s646_s1 }
  0x18   :  { %v79_v22 = vand.u32 4294901760, %v49_v18  ;;  %v160_v24 = vand.u32 4294901760, %v159_v20  ;;  %v166_v28 = vsub.f32 %v44_v5, %v64_v9  ;;  %v173_v29 = vsub.f32 %v45_v6, %v67_v10  ;;  %s975_s27 = scalar_lea.vmem %s647_s1, 256  ;;  %p980_p9 = scmp.lt.s32.totalorder %s647_s1, %s647_s1 }
  0x19   :  { %34 = vperm.xlu0 %952, %v27_v7   ;;  %889 = vmatprep.subr.bf16.mxu0 %v1043_v13  ;;  %v153_v23 = vand.u32 4294901760, %v152_v19  ;;  %v1053_v25 = vpack.c.bf16 %v73_v16, %v70_v15  ;;  %v180_v38 = vsub.f32 %v46_v11, %v70_v15  ;;  %v187_v39 = vsub.f32 %v47_v12, %v73_v16  ;;  %p976_p8 = scmp.ne.s32.totalorder %s647_s1, %s975_s27  ;;  %p981_p10 = scmp.lt.s32.totalorder %s975_s27, %s975_s27 }
  0x1a   :  { %841 = vmatprep.subr.bf16.mxu1 %v1043_v13  ;;  %891 = vmatpush3.bf16.msra.mxu0 %v1043_v13  ;;  %v161_v27 = vsub.f32 %v159_v20, %v160_v24  ;;  %v1057_v30 = vpack.c.bf16 %v79_v22, %v76_v21  ;;  %v167_v33 = vand.u32 4294901760, %v166_v28  ;;  %v174_v34 = vand.u32 4294901760, %v173_v29 }
  0x1b   :  { %843 = vmatpush3.bf16.msra.mxu1 %v1043_v13  ;;  %893 = vmatprep.subr.bf16.mxu0 %v1045_v14  ;;  %v154_v26 = vsub.f32 %v152_v19, %v153_v23  ;;  %v904_v40 = vpack.c.bf16 %v160_v24, %v153_v23  ;;  %v181_v44 = vand.u32 4294901760, %v180_v38  ;;  %v188_v45 = vand.u32 4294901760, %v187_v39  ;;  %p982_p11 = por %p981_p10, %p980_p9 }
  0x1c   :  { %845 = vmatprep.subr.bf16.mxu1 %v1045_v14  ;;  %v162_v32 = vand.u32 4294901760, %v161_v27  ;;  %v1061_v35 = vpack.c.bf16 %v174_v34, %v167_v33  ;;  %v168_v36 = vsub.f32 %v166_v28, %v167_v33  ;;  %v175_v37 = vsub.f32 %v173_v29, %v174_v34 }
  0x1d   :  { %v155_v31 = vand.u32 4294901760, %v154_v26  ;;  %v194_v47 = vsub.f32 %v48_v17, %v76_v21  ;;  %v201_v48 = vsub.f32 %v49_v18, %v79_v22  ;;  %v912_v49 = vpack.c.bf16 %v188_v45, %v181_v44  ;;  %p983_p12 = pnand %p982_p11, %p976_p8 }
  0x1e   :  { %895 = vmatpush3.bf16.msra.mxu0 %v1045_v14  ;;  %v169_v42 = vand.u32 4294901760, %v168_v36  ;;  %v176_v43 = vand.u32 4294901760, %v175_v37  ;;  %v182_v50 = vsub.f32 %v180_v38, %v181_v44  ;;  %v189_v51 = vsub.f32 %v187_v39, %v188_v45 }
  0x1f   :  { %847 = vmatpush3.bf16.msra.mxu1 %v1045_v14  ;;  %897 = vmatprep.subr.bf16.mxu0 %v1053_v25  ;;  %v856_v41 = vpack.c.bf16 %v162_v32, %v155_v31  ;;  %v195_v52 = vand.u32 4294901760, %v194_v47  ;;  %v202_v53 = vand.u32 4294901760, %v201_v48  ;;  %v872_v63 = vpack.c.bf16 %v159_v20, %v152_v19 }
  0x20   :  { %849 = vmatprep.subr.bf16.mxu1 %v1053_v25  ;;  %v860_v46 = vpack.c.bf16 %v176_v43, %v169_v42  ;;  %v183_v54 = vand.u32 4294901760, %v182_v50  ;;  %v190_v55 = vand.u32 4294901760, %v189_v51  ;;  %v876_v0 = vpack.c.bf16 %v173_v29, %v166_v28 }
  0x21   :  { %v916_v56 = vpack.c.bf16 %v202_v53, %v195_v52  ;;  %v196_v57 = vsub.f32 %v194_v47, %v195_v52  ;;  %v203_v58 = vsub.f32 %v201_v48, %v202_v53  ;;  %v880_v1 = vpack.c.bf16 %v187_v39, %v180_v38 }
  0x22   :  { %899 = vmatpush3.bf16.msra.mxu0 %v1053_v25  ;;  %v864_v59 = vpack.c.bf16 %v190_v55, %v183_v54  ;;  %v884_v2 = vpack.c.bf16 %v201_v48, %v194_v47  ;;  %v29_v4 = vand.u32 127, %v28_v3  ;;  %v1005_v6 = vmov 0.0  }
  0x23   :  { %851 = vmatpush3.bf16.msra.mxu1 %v1053_v25  ;;  %901 = vmatprep.subr.bf16.mxu0 %v1057_v30  ;;  %v197_v60 = vand.u32 4294901760, %v196_v57  ;;  %v204_v61 = vand.u32 4294901760, %v203_v58 }
  0x24   :  { %853 = vmatprep.subr.bf16.mxu1 %v1057_v30 }
  0x25   :  { %v868_v62 = vpack.c.bf16 %v204_v61, %v197_v60 }
  0x26   :  { %903 = vmatpush3.bf16.msra.mxu0 %v1057_v30 }
  0x27   :  { %855 = vmatpush3.bf16.msra.mxu1 %v1057_v30  ;;  %905 = vmatprep.subr.bf16.mxu0 %v904_v40 }
  0x28   :  { %857 = vmatprep.subr.bf16.mxu1 %v856_v41 }
  0x94   :  { %v32_v5 = vpop.permute.xlu0 %31 }
  0x95   :  { %vm36_vm1 = vcmp.eq.s32.totalorder %v32_v5, %v29_v4 }
  0x96   :  { %v658_v7 = vsel %vm36_vm1, 1.0, %v1005_v6 }
  0x97   :  { %v52_v8 = vsel %vm50_vm0, %v658_v7, 0 }
  0x98   :  { %v131_v9 = vsub.f32 %v52_v8, %v52_v8  ;;  %v35_v10 = vpop.permute.xlu0 %34 }
  0x99   :  { %vm37_vm2 = vcmp.eq.s32.totalorder %v35_v10, %v29_v4 }
  0x9a   :  { %v659_v11 = vsel %vm37_vm2, 1.0, %v1005_v6  ;;  %v132_v12 = vand.u32 4294901760, %v131_v9 }
  0x9b   :  { %v55_v15 = vsel %vm50_vm0, %v659_v11, 0 }
  0x9c   :  { %v141_v16 = vsub.f32 %v55_v15, %v55_v15  ;;  %799 = vmatprep.mubr.f32.mxu0 %v132_v12  ;;  %v133_v17 = vsub.f32 %v131_v9, %v132_v12 }
  0x9e   :  { %v134_v18 = vand.u32 4294901760, %v133_v17  ;;  %v142_v19 = vand.u32 4294901760, %v141_v16 }
  0xa0   :  { %742 = vmatprep.mubr.f32.mxu1 %v134_v18  ;;  %800 = vmatmul.mubr.f32.vlgmr.msra.gmra.mrb[0].mxu0 %v142_v19  ;;  %v143_v20 = vsub.f32 %v141_v16, %v142_v19 }
  0xa1   :  { %907 = vmatpush3.bf16.msra.mxu0 %v904_v40  ;;  %818 = vmatprep.mubr.msk.f32.mxu0 %vm50_vm0, %v658_v7 }
  0xa2   :  { %909 = vmatprep.subr.bf16.mxu0 %v1061_v35  ;;  %v144_v21 = vand.u32 4294901760, %v143_v20 }
  0xa4   :  { %743 = vmatmul.mubr.f32.vlgmr.msra.gmra.mrb[0].mxu1 %v144_v21 }
  0xa5   :  { %859 = vmatpush3.bf16.msra.mxu1 %v856_v41  ;;  %911 = vmatpush3.bf16.msra.mxu0 %v1061_v35 }
  0xa6   :  { %761 = vmatprep.mubr.msk.f32.mxu1 %vm50_vm0, %v658_v7  ;;  %861 = vmatprep.subr.bf16.mxu1 %v860_v46 }
  0xa7   :  { %913 = vmatprep.subr.bf16.mxu0 %v912_v49 }
  0xa9   :  { %863 = vmatpush3.bf16.msra.mxu1 %v860_v46  ;;  %915 = vmatpush3.bf16.msra.mxu0 %v912_v49 }
  0xaa   :  { %865 = vmatprep.subr.bf16.mxu1 %v864_v59  ;;  %917 = vmatprep.subr.bf16.mxu0 %v916_v56 }
  0xad   :  { %867 = vmatpush3.bf16.msra.mxu1 %v864_v59  ;;  %919 = vmatpush3.bf16.msra.mxu0 %v916_v56 }
  0xae   :  { %869 = vmatprep.subr.bf16.mxu1 %v868_v62  ;;  %921 = vmatprep.subr.bf16.mxu0 %v1043_v13 }
  0xb0   :  { %819 = vmatmul.mubr.msk.f32.vlgmr.msra.gmra.mrb[0].mxu0 %vm50_vm0, %v659_v11 }
  0xb1   :  { %871 = vmatpush3.bf16.msra.mxu1 %v868_v62  ;;  %923 = vmatpush3.bf16.msra.mxu0 %v1043_v13 }
  0xb2   :  { %837 = vmatprep.mubr.msk.f32.mxu0 %vm50_vm0, %v658_v7  ;;  %873 = vmatprep.subr.bf16.mxu1 %v872_v63 }
  0xb3   :  { %925 = vmatprep.subr.bf16.mxu0 %v1045_v14 }
  0xb4   :  { %762 = vmatmul.mubr.msk.f32.vlgmr.msra.gmra.mrb[0].mxu1 %vm50_vm0, %v659_v11 }
  0xb5   :  { %875 = vmatpush3.bf16.msra.mxu1 %v872_v63  ;;  %780 = vmatprep.mubr.f32.mxu1 %v131_v9 }
  0xb6   :  { %927 = vmatpush3.bf16.msra.mxu0 %v1045_v14  ;;  %877 = vmatprep.subr.bf16.mxu1 %v876_v0 }
  0xb7   :  { %929 = vmatprep.subr.bf16.mxu0 %v1053_v25 }
  0xb9   :  { %879 = vmatpush3.bf16.msra.mxu1 %v876_v0 }
  0xba   :  { %931 = vmatpush3.bf16.msra.mxu0 %v1053_v25  ;;  %881 = vmatprep.subr.bf16.mxu1 %v880_v1 }
  0xbb   :  { %933 = vmatprep.subr.bf16.mxu0 %v1057_v30 }
  0xbd   :  { %883 = vmatpush3.bf16.msra.mxu1 %v880_v1 }
  0xbe   :  { %935 = vmatpush3.bf16.msra.mxu0 %v1057_v30  ;;  %885 = vmatprep.subr.bf16.mxu1 %v884_v2 }
  0xc1   :  { %838 = vmatmul.mubr.msk.f32.vlgmr.msra.gmra.mrb[0].mxu0 %vm50_vm0, %v659_v11  ;;  %887 = vmatpush3.bf16.msra.mxu1 %v884_v2 }
  0xc4   :  { %781 = vmatmul.mubr.f32.vlgmr.msra.gmra.mrb[0].mxu1 %v141_v16 }
 0x194   :  { %v839_v13 = vpop.f32.mrb[0].mxu0 }
 0x195   :  { %v627_v22 = vpop.f32.mrb[1].mxu0 }
 0x197   :  { %v782_v14 = vpop.f32.mrb[0].mxu1 }
 0x198   :  { %v936_v23 = vadd.f32 %v839_v13, %v782_v14  ;;  %v351_v24 = vpop.f32.mrb[1].mxu1 }
 0x199   :  { %v937_v26 = vadd.f32 %v627_v22, %v351_v24 }
 0x19a   :  { %v638_v25 = vmul.f32 11.313708, %v936_v23 }
 0x19b   :  { %v637_v27 = vmul.f32 11.313708, %v937_v26 }
 0x19c   :  { %640 = vst [vmem:[#allocation5 + $0x8] sm:$0xff] %v638_v25 }
 0x19d   :  { %639 = vst [vmem:[#allocation5] sm:$0xff] %v637_v27 }
 0x19e   :  { %986 = shalt.err (!%p983_p12)
}
 0x19f   :  { %s987_s30 = scalar_lea.hbm %s1104_s2, 256 }
 0x1a0   :  { %p988_p13 = scmp.ne.s32.totalorder %s1104_s2, %s987_s30  ;;  %p991_p0 = scmp.lt.u32.totalorder %s987_s30, %s1104_s2 }
 0x1a2   :  { %p993_p1 = pnand %p991_p0, %p988_p13 }
 0x1a4   :  { %996 = shalt.err (!%p993_p1)
}
 0x1a5   :  { %652 = dma.vmem_to_hbm [thread:$0]  %s647_s1, 256, %s1104_s2, [#allocation4], %s1002_s19, %s1002_s19, %s1003_s20  }
 0x1a6   :  { %999 = dma.done.wait [#allocation4], 256  }
 0x1a7   :  { %1000 = vsyncadd [#allocation4], 4294967040 }
 0x1a8   :  { %656 = vsyncpa [#allocation3], 1 }
 0x1a9   :  { %657 = vsyncpa [#allocation4], 1 }

</bundles_post_ra>
